<compile_context>
chip_gen: v6e
topology: v6e:2x2x1
jax: 0.10.0
libtpu: 0.0.40
codegen_flags: <defaults>
</compile_context>

<pallas_src>
import jax
import jax.numpy as jnp
from jax.experimental import pallas as pl
from jax.experimental.pallas import tpu as pltpu

EPS = 1e-5                          # nn.InstanceNorm2d default eps
_VMEM_BUDGET = 28 * 1024 * 1024     # target per-step footprint (v7x-safe)
_VMEM_CAP = 48 * 1024 * 1024


def _round_up(x, m):
    return (x + m - 1) // m * m


# ---------------------------------------------------------------------------
# Forward
# ---------------------------------------------------------------------------
def conv_layer_forward(x, weight, bias, gamma=None, beta=None, *, kernel_size,
                       stride, norm_type="instance", tq=None,
                       compute_dtype=jnp.bfloat16):
    """Equivalent of ConvLayer.forward.  x: NCHW float32."""
    n, c_in, h, w = x.shape
    c_out = weight.shape[0]
    k = kernel_size
    pad = k // 2
    hp, wp = h + 2 * pad, w + 2 * pad
    h_out = (hp - k) // stride + 1
    w_out = (wp - k) // stride + 1
    h1 = hp - k + 1                       # dense (stride-1) output rows
    q_len = h1 * wp                       # dense flattened output positions
    k_dim = c_in * k * k
    c_store = _round_up(c_out, 16)        # bf16 sublane packing

    halo = (k - 1) * wp + (k - 1)         # extra input lanes needed past a tile
    halo_blk = max(128, _round_up(halo, 128))

    # --- q-tile selection from a per-step VMEM estimate -------------------
    def need_bytes(t):
        bufs = 2 * (c_in * t * 2              # body (bf16, double buffered)
                    + c_in * halo_blk * 2     # halo
                    + c_store * k_dim * 2     # weight
                    + t * 4                   # mask (f32)
                    + c_store * t * 2         # conv intermediate (bf16)
                    + 2 * c_store * 4)        # stats
        temps = (c_in * (t + halo_blk) * 2    # window
                 + k_dim * t * 2              # patches
                 + 3 * c_store * t * 4)       # y / masked / squared (f32)
        return bufs + temps

    tq_req = 1024 if tq is None else int(tq)
    tq = _round_up(max(tq_req, halo_blk), halo_blk)   # halo_blk | tq, 128 | tq
    while tq > halo_blk and need_bytes(tq) > _VMEM_BUDGET:
        tq -= halo_blk
    vmem_limit = int(min(_VMEM_CAP,
                         max(32 * 1024 * 1024,
                             need_bytes(tq) + 16 * 1024 * 1024)))

    num_tiles = _round_up(q_len, tq) // tq
    q_pad = num_tiles * tq
    l_total = q_pad + tq                  # room for the last tile's halo block
    ratio = tq // halo_blk
    grid = (n, num_tiles)

    # --- glue: reflection pad, flatten q = row*Wp + col, cast bf16, pad ----
    x_pad = jnp.pad(x, ((0, 0), (0, 0), (pad, pad), (pad, pad)), mode="reflect")
    xf = x_pad.reshape(n, c_in, hp * wp).astype(compute_dtype)
    xf = jnp.pad(xf, ((0, 0), (0, 0), (0, l_total - hp * wp)))

    # weight reordered to match patch row order (kh, kw, c_in)
    w2 = weight.transpose(0, 2, 3, 1).reshape(c_out, k_dim)
    w2 = jnp.pad(w2, ((0, c_store - c_out), (0, 0))).astype(compute_dtype)

    # validity mask over dense q positions (selects the strided output grid,
    # drops the W reflection-pad columns and the q_pad tail)
    q_idx = jnp.arange(q_pad, dtype=jnp.int32)
    r1, w1 = q_idx // wp, q_idx % wp
    valid = ((r1 % stride == 0) & (r1 // stride < h_out)
             & (w1 % stride == 0) & (w1 // stride < w_out))
    mask = valid.astype(jnp.float32)[None, :]                   # (1, q_pad)

    body_spec = pl.BlockSpec((1, c_in, tq), lambda i, j: (i, 0, j))
    halo_spec = pl.BlockSpec((1, c_in, halo_blk),
                             lambda i, j: (i, 0, (j + 1) * ratio))
    w_spec = pl.BlockSpec((c_store, k_dim), lambda i, j: (0, 0))
    mask_spec = pl.BlockSpec((1, tq), lambda i, j: (0, j))
    conv_spec = pl.BlockSpec((1, c_store, tq), lambda i, j: (i, 0, j))

    offsets = [kh * wp + kw for kh in range(k) for kw in range(k)]

    def _patches(body_ref, halo_ref):
        """In-kernel im2col: static lane-offset views of one q window."""
        window = jnp.concatenate([body_ref[0], halo_ref[0]], axis=-1)
        parts = [window[:, off:off + tq] for off in offsets]
        return jnp.concatenate(parts, axis=0)                   # (k_dim, tq)

    if norm_type == "instance":
        def conv_stats_kernel(body_ref, halo_ref, w_ref, m_ref,
                              conv_ref, stats_ref, acc_ref):
            j = pl.program_id(1)
            patches = _patches(body_ref, halo_ref)
            y = jnp.dot(w_ref[...], patches,
                        preferred_element_type=jnp.float32)     # (C_store, tq)
            conv_ref[0] = y.astype(conv_ref.dtype)              # bf16 store
            ym = y * m_ref[...]                                  # zero invalid q

            @pl.when(j == 0)
            def _():
                acc_ref[...] = jnp.zeros_like(acc_ref)

            acc_ref[:c_store, :] += jnp.sum(ym, axis=1, keepdims=True)
            acc_ref[c_store:, :] += jnp.sum(ym * ym, axis=1, keepdims=True)

            @pl.when(j == pl.num_programs(1) - 1)
            def _():
                stats_ref[0] = acc_ref[...]

        stats_spec = pl.BlockSpec((1, 2 * c_store, 1), lambda i, j: (i, 0, 0))
        conv_q, stats = pl.pallas_call(
            conv_stats_kernel,
            out_shape=(jax.ShapeDtypeStruct((n, c_store, q_pad), compute_dtype),
                       jax.ShapeDtypeStruct((n, 2 * c_store, 1), jnp.float32)),
            grid_spec=pltpu.PrefetchScalarGridSpec(
                num_scalar_prefetch=0, grid=grid,
                in_specs=[body_spec, halo_spec, w_spec, mask_spec],
                out_specs=[conv_spec, stats_spec],
                scratch_shapes=[pltpu.VMEM((2 * c_store, 1), jnp.float32)]),
            compiler_params=pltpu.CompilerParams(
                dimension_semantics=("parallel", "arbitrary"),
                vmem_limit_bytes=vmem_limit),
        )(xf, xf, w2, mask)

        # Tiny glue: per-(sample, channel) scale/shift from accumulated stats.
        # Conv bias is dropped on purpose: InstanceNorm's mean removes it.
        cnt = float(h_out * w_out)
        sums = stats[:, :c_store, 0]
        sqs = stats[:, c_store:, 0]
        mean = sums / cnt
        var = jnp.maximum(sqs / cnt - mean * mean, 0.0)
        gamma_p = jnp.pad(gamma, (0, c_store - c_out), constant_values=1.0)
        beta_p = jnp.pad(beta, (0, c_store - c_out))
        scale = gamma_p[None, :] * jax.lax.rsqrt(var + EPS)
        shift = beta_p[None, :] - mean * scale
        ss = jnp.concatenate([scale, shift], axis=1)[:, :, None]  # (N,2C,1)

        def affine_kernel(y_ref, ss_ref, o_ref):
            yv = y_ref[0].astype(jnp.float32)                    # (C_store, tq)
            sv = ss_ref[0]                                       # (2C, 1)
            o_ref[0] = yv * sv[:c_store, :] + sv[c_store:, :]

        out_q = pl.pallas_call(
            affine_kernel,
            out_shape=jax.ShapeDtypeStruct((n, c_store, q_pad), jnp.float32),
            grid_spec=pltpu.PrefetchScalarGridSpec(
                num_scalar_prefetch=0, grid=grid,
                in_specs=[conv_spec,
                          pl.BlockSpec((1, 2 * c_store, 1),
                                       lambda i, j: (i, 0, 0))],
                out_specs=conv_spec),
            compiler_params=pltpu.CompilerParams(
                dimension_semantics=("parallel", "parallel"),
                vmem_limit_bytes=vmem_limit),
        )(conv_q, ss)
    else:
        def conv_bias_kernel(body_ref, halo_ref, w_ref, b_ref, o_ref):
            patches = _patches(body_ref, halo_ref)
            y = jnp.dot(w_ref[...], patches,
                        preferred_element_type=jnp.float32)
            o_ref[0] = (y + b_ref[0]).astype(o_ref.dtype)

        b2 = jnp.pad(bias, (0, c_store - c_out)).reshape(1, c_store, 1)
        out_q = pl.pallas_call(
            conv_bias_kernel,
            out_shape=jax.ShapeDtypeStruct((n, c_store, q_pad), jnp.float32),
            grid_spec=pltpu.PrefetchScalarGridSpec(
                num_scalar_prefetch=0, grid=grid,
                in_specs=[body_spec, halo_spec, w_spec,
                          pl.BlockSpec((1, c_store, 1),
                                       lambda i, j: (0, 0, 0))],
                out_specs=conv_spec),
            compiler_params=pltpu.CompilerParams(
                dimension_semantics=("parallel", "parallel"),
                vmem_limit_bytes=vmem_limit),
        )(xf, xf, w2, b2)

    # Extract the strided, unpadded output columns and reshape to NCHW.
    out = out_q[:, :c_out, :q_len].reshape(n, c_out, h1, wp)
    out = out[:, :, :(h_out - 1) * stride + 1:stride,
              :(w_out - 1) * stride + 1:stride]
    return out


# ---------------------------------------------------------------------------
# Pure-JAX reference (f32, HIGHEST precision)
# ---------------------------------------------------------------------------
def _reference(x, weight, bias, gamma, beta, *, kernel_size, stride,
               norm_type="instance"):
    pad = kernel_size // 2
    xp = jnp.pad(x, ((0, 0), (0, 0), (pad, pad), (pad, pad)), mode="reflect")
    y = jax.lax.conv_general_dilated(
        xp, weight, (stride, stride), "VALID",
        dimension_numbers=("NCHW", "OIHW", "NCHW"),
        precision=jax.lax.Precision.HIGHEST)
    y = y + bias[None, :, None, None]
    if norm_type == "instance":
        mean = y.mean(axis=(2, 3), keepdims=True)
        var = ((y - mean) ** 2).mean(axis=(2, 3), keepdims=True)
        y = (y - mean) / jnp.sqrt(var + EPS)
        y = y * gamma[None, :, None, None] + beta[None, :, None, None]
    return y


if __name__ == "__main__":
    # ConvLayer(in_channels=4, out_channels=8, kernel_size=3, ...) on 2x4x16x16.
    batch, c_in, c_out, k, spatial = 2, 4, 8, 3, 16

    key = jax.random.PRNGKey(0)
    kx, kw, kb, kg, kbt = jax.random.split(key, 5)
    x = jax.random.normal(kx, (batch, c_in, spatial, spatial), jnp.float32)
    weight = jax.random.normal(kw, (c_out, c_in, k, k), jnp.float32) * 0.1
    bias = jax.random.normal(kb, (c_out,), jnp.float32) * 0.1
    gamma = 1.0 + 0.1 * jax.random.normal(kg, (c_out,), jnp.float32)
    beta = 0.1 * jax.random.normal(kbt, (c_out,), jnp.float32)

    # tq=128 -> three q tiles per sample: exercises the cross-tile stats
    # accumulation ("arbitrary" grid axis) even at this small test size.
    out = conv_layer_forward(x, weight, bias, gamma, beta,
                             kernel_size=k, stride=1,
                             norm_type="instance", tq=128)
    out = jax.block_until_ready(out)
    ref = _reference(x, weight, bias, gamma, beta,
                     kernel_size=k, stride=1, norm_type="instance")
    assert out.shape == (batch, c_out, spatial, spatial), out.shape
    assert jnp.allclose(out, ref, atol=2e-2, rtol=2e-2), \
        float(jnp.max(jnp.abs(out - ref)))

    # Strided conv (stride=2): exercises the dense-conv + validity-mask path.
    out_s2 = conv_layer_forward(x, weight, bias, gamma, beta,
                                kernel_size=k, stride=2,
                                norm_type="instance", tq=128)
    out_s2 = jax.block_until_ready(out_s2)
    ref_s2 = _reference(x, weight, bias, gamma, beta,
                        kernel_size=k, stride=2, norm_type="instance")
    assert out_s2.shape == ref_s2.shape, out_s2.shape
    assert jnp.allclose(out_s2, ref_s2, atol=2e-2, rtol=2e-2), \
        float(jnp.max(jnp.abs(out_s2 - ref_s2)))

    # norm_type != 'instance' (conv + bias only), auto tile size (single tile).
    out_nn = conv_layer_forward(x, weight, bias, gamma, beta,
                                kernel_size=k, stride=1, norm_type="none")
    out_nn = jax.block_until_ready(out_nn)
    ref_nn = _reference(x, weight, bias, gamma, beta,
                        kernel_size=k, stride=1, norm_type="none")
    assert jnp.allclose(out_nn, ref_nn, atol=2e-2, rtol=2e-2), \
        float(jnp.max(jnp.abs(out_nn - ref_nn)))

    print("KERNEL_OK")
</pallas_src>

<mosaic_0001>
module attributes {stable_mosaic.version = 11 : i64} {
  func.func @conv_stats_kernel(%arg0: i32, %arg1: i32, %arg2: memref<1x4x128xbf16, #tpu.memory_space<vmem>>, %arg3: memref<1x4x128xbf16, #tpu.memory_space<vmem>>, %arg4: memref<16x36xbf16, #tpu.memory_space<vmem>>, %arg5: memref<1x128xf32, #tpu.memory_space<vmem>>, %arg6: memref<1x16x128xbf16, #tpu.memory_space<vmem>>, %arg7: memref<1x32x1xf32, #tpu.memory_space<vmem>>, %arg8: memref<32x1xf32, #tpu.memory_space<vmem>>) attributes {dimension_semantics = [#tpu.dimension_semantics<parallel>, #tpu.dimension_semantics<arbitrary>], iteration_bounds = array<i64: 2, 3>, scalar_prefetch = 0 : i64, scratch_operands = 1 : i64, tpu.core_type = #tpu.core_type<tc>, window_params = [{transform_indices = @transform_0, window_bounds = array<i64: 1, 4, 128>}, {transform_indices = @transform_1, window_bounds = array<i64: 1, 4, 128>}, {pipeline_mode = #tpu.pipeline_mode<synchronous>, transform_indices = @transform_2, window_bounds = array<i64: 16, 36>}, {transform_indices = @transform_3, window_bounds = array<i64: 1, 128>}, {transform_indices = @transform_4, window_bounds = array<i64: 1, 16, 128>}, {transform_indices = @transform_5, window_bounds = array<i64: 1, 32, 1>}]} {
    %c0 = arith.constant 0 : index
    %c0_0 = arith.constant 0 : index
    %c0_1 = arith.constant 0 : index
    %0 = vector.load %arg2[%c0, %c0_0, %c0_1] : memref<1x4x128xbf16, #tpu.memory_space<vmem>>, vector<1x4x128xbf16>
    %1 = vector.shape_cast %0 : vector<1x4x128xbf16> to vector<4x128xbf16>
    %c0_2 = arith.constant 0 : index
    %c0_3 = arith.constant 0 : index
    %c0_4 = arith.constant 0 : index
    %2 = vector.load %arg3[%c0_2, %c0_3, %c0_4] : memref<1x4x128xbf16, #tpu.memory_space<vmem>>, vector<1x4x128xbf16>
    %3 = vector.shape_cast %2 : vector<1x4x128xbf16> to vector<4x128xbf16>
    %4 = tpu.concatenate %1, %3 in 1 : vector<4x128xbf16>, vector<4x128xbf16> -> vector<4x256xbf16>
    %5 = vector.extract_strided_slice %4 {offsets = [0, 0], sizes = [4, 128], strides = [1, 1]} : vector<4x256xbf16> to vector<4x128xbf16>
    %6 = vector.extract_strided_slice %4 {offsets = [0, 1], sizes = [4, 128], strides = [1, 1]} : vector<4x256xbf16> to vector<4x128xbf16>
    %7 = vector.extract_strided_slice %4 {offsets = [0, 2], sizes = [4, 128], strides = [1, 1]} : vector<4x256xbf16> to vector<4x128xbf16>
    %8 = vector.extract_strided_slice %4 {offsets = [0, 18], sizes = [4, 128], strides = [1, 1]} : vector<4x256xbf16> to vector<4x128xbf16>
    %9 = vector.extract_strided_slice %4 {offsets = [0, 19], sizes = [4, 128], strides = [1, 1]} : vector<4x256xbf16> to vector<4x128xbf16>
    %10 = vector.extract_strided_slice %4 {offsets = [0, 20], sizes = [4, 128], strides = [1, 1]} : vector<4x256xbf16> to vector<4x128xbf16>
    %11 = vector.extract_strided_slice %4 {offsets = [0, 36], sizes = [4, 128], strides = [1, 1]} : vector<4x256xbf16> to vector<4x128xbf16>
    %12 = vector.extract_strided_slice %4 {offsets = [0, 37], sizes = [4, 128], strides = [1, 1]} : vector<4x256xbf16> to vector<4x128xbf16>
    %13 = vector.extract_strided_slice %4 {offsets = [0, 38], sizes = [4, 128], strides = [1, 1]} : vector<4x256xbf16> to vector<4x128xbf16>
    %14 = tpu.concatenate %5, %6, %7, %8, %9, %10, %11, %12, %13 in 0 : vector<4x128xbf16>, vector<4x128xbf16>, vector<4x128xbf16>, vector<4x128xbf16>, vector<4x128xbf16>, vector<4x128xbf16>, vector<4x128xbf16>, vector<4x128xbf16>, vector<4x128xbf16> -> vector<36x128xbf16>
    %c0_5 = arith.constant 0 : index
    %c0_6 = arith.constant 0 : index
    %15 = vector.load %arg4[%c0_5, %c0_6] : memref<16x36xbf16, #tpu.memory_space<vmem>>, vector<16x36xbf16>
    %cst = arith.constant dense<0.000000e+00> : vector<16x128xf32>
    %16 = tpu.matmul %15, %14, %cst {dimension_numbers = #tpu.dot_dimension_numbers<[1], [0], [0], [1], [0, 0, 1, 1], [], []>} : vector<16x36xbf16>, vector<36x128xbf16>, vector<16x128xf32> -> vector<16x128xf32>
    %17 = arith.truncf %16 : vector<16x128xf32> to vector<16x128xbf16>
    %c0_7 = arith.constant 0 : index
    %c0_8 = arith.constant 0 : index
    %c0_9 = arith.constant 0 : index
    %18 = vector.load %arg6[%c0_7, %c0_8, %c0_9] : memref<1x16x128xbf16, #tpu.memory_space<vmem>>, vector<1x16x128xbf16>
    %19 = vector.shape_cast %18 : vector<1x16x128xbf16> to vector<16x128xbf16>
    %20 = vector.shape_cast %17 : vector<16x128xbf16> to vector<1x16x128xbf16>
    tpu.vector_store %arg6[%c0_7, %c0_8, %c0_9], %20 {strides = array<i32>} : memref<1x16x128xbf16, #tpu.memory_space<vmem>>, vector<1x16x128xbf16>,
    %c0_10 = arith.constant 0 : index
    %c0_11 = arith.constant 0 : index
    %21 = vector.load %arg5[%c0_10, %c0_11] : memref<1x128xf32, #tpu.memory_space<vmem>>, vector<1x128xf32>
    %22 = vector.broadcast %21 : vector<1x128xf32> to vector<16x128xf32>
    %23 = arith.mulf %16, %22 : vector<16x128xf32>
    %c0_i32 = arith.constant 0 : i32
    %24 = arith.cmpi eq, %arg1, %c0_i32 : i32
    %25 = arith.extui %24 : i1 to i32
    %c0_i32_12 = arith.constant 0 : i32
    %26 = arith.cmpi ne, %25, %c0_i32_12 : i32
    scf.if %26 {
      %cst_23 = arith.constant 0.000000e+00 : f32
      %41 = vector.broadcast %cst_23 : f32 to vector<32x1xf32>
      %c0_24 = arith.constant 0 : index
      %c0_25 = arith.constant 0 : index
      %42 = vector.load %arg8[%c0_24, %c0_25] : memref<32x1xf32, #tpu.memory_space<vmem>>, vector<32x1xf32>
      tpu.vector_store %arg8[%c0_24, %c0_25], %41 {strides = array<i32>} : memref<32x1xf32, #tpu.memory_space<vmem>>, vector<32x1xf32>,
    } else {
    }
    %c0_13 = arith.constant 0 : index
    %c0_14 = arith.constant 0 : index
    %27 = vector.load %arg8[%c0_13, %c0_14] : memref<32x1xf32, #tpu.memory_space<vmem>>, vector<16x1xf32>
    %cst_15 = arith.constant dense<0.000000e+00> : vector<16xf32>
    %28 = vector.multi_reduction <add>, %23, %cst_15 [1] : vector<16x128xf32> to vector<16xf32>
    %29 = vector.shape_cast %28 : vector<16xf32> to vector<16x1xf32>
    %30 = arith.addf %27, %29 : vector<16x1xf32>
    %c0_16 = arith.constant 0 : index
    %c0_17 = arith.constant 0 : index
    %31 = vector.load %arg8[%c0_16, %c0_17] : memref<32x1xf32, #tpu.memory_space<vmem>>, vector<16x1xf32>
    tpu.vector_store %arg8[%c0_16, %c0_17], %30 {strides = array<i32>} : memref<32x1xf32, #tpu.memory_space<vmem>>, vector<16x1xf32>,
    %c16 = arith.constant 16 : index
    %c0_18 = arith.constant 0 : index
    %32 = vector.load %arg8[%c16, %c0_18] : memref<32x1xf32, #tpu.memory_space<vmem>>, vector<16x1xf32>
    %33 = arith.mulf %23, %23 : vector<16x128xf32>
    %cst_19 = arith.constant dense<0.000000e+00> : vector<16xf32>
    %34 = vector.multi_reduction <add>, %33, %cst_19 [1] : vector<16x128xf32> to vector<16xf32>
    %35 = vector.shape_cast %34 : vector<16xf32> to vector<16x1xf32>
    %36 = arith.addf %32, %35 : vector<16x1xf32>
    %c16_20 = arith.constant 16 : index
    %c0_21 = arith.constant 0 : index
    %37 = vector.load %arg8[%c16_20, %c0_21] : memref<32x1xf32, #tpu.memory_space<vmem>>, vector<16x1xf32>
    tpu.vector_store %arg8[%c16_20, %c0_21], %36 {strides = array<i32>} : memref<32x1xf32, #tpu.memory_space<vmem>>, vector<16x1xf32>,
    %c2_i32 = arith.constant 2 : i32
    %38 = arith.cmpi eq, %arg1, %c2_i32 : i32
    %39 = arith.extui %38 : i1 to i32
    %c0_i32_22 = arith.constant 0 : i32
    %40 = arith.cmpi ne, %39, %c0_i32_22 : i32
    scf.if %40 {
      %c0_23 = arith.constant 0 : index
      %c0_24 = arith.constant 0 : index
      %41 = vector.load %arg8[%c0_23, %c0_24] : memref<32x1xf32, #tpu.memory_space<vmem>>, vector<32x1xf32>
      %c0_25 = arith.constant 0 : index
      %c0_26 = arith.constant 0 : index
      %c0_27 = arith.constant 0 : index
      %42 = vector.load %arg7[%c0_25, %c0_26, %c0_27] : memref<1x32x1xf32, #tpu.memory_space<vmem>>, vector<1x32x1xf32>
      %43 = vector.shape_cast %42 : vector<1x32x1xf32> to vector<32x1xf32>
      %44 = vector.shape_cast %41 : vector<32x1xf32> to vector<1x32x1xf32>
      tpu.vector_store %arg7[%c0_25, %c0_26, %c0_27], %44 {strides = array<i32>} : memref<1x32x1xf32, #tpu.memory_space<vmem>>, vector<1x32x1xf32>,
    } else {
    }
    return
  }
  func.func @transform_0(%arg0: i32, %arg1: i32) -> (i32, i32, i32) {
    %c0_i32 = arith.constant 0 : i32
    %c0_i32_0 = arith.constant 0 : i32
    return %arg0, %c0_i32, %arg1 : i32, i32, i32
  }
  func.func @transform_1(%arg0: i32, %arg1: i32) -> (i32, i32, i32) {
    %c1_i32 = arith.constant 1 : i32
    %0 = arith.addi %arg1, %c1_i32 : i32
    %c1_i32_0 = arith.constant 1 : i32
    %1 = arith.muli %0, %c1_i32_0 : i32
    %c0_i32 = arith.constant 0 : i32
    %c0_i32_1 = arith.constant 0 : i32
    return %arg0, %c0_i32, %1 : i32, i32, i32
  }
  func.func @transform_2(%arg0: i32, %arg1: i32) -> (i32, i32) {
    %c0_i32 = arith.constant 0 : i32
    %c0_i32_0 = arith.constant 0 : i32
    %c0_i32_1 = arith.constant 0 : i32
    return %c0_i32, %c0_i32_0 : i32, i32
  }
  func.func @transform_3(%arg0: i32, %arg1: i32) -> (i32, i32) {
    %c0_i32 = arith.constant 0 : i32
    %c0_i32_0 = arith.constant 0 : i32
    return %c0_i32, %arg1 : i32, i32
  }
  func.func @transform_4(%arg0: i32, %arg1: i32) -> (i32, i32, i32) {
    %c0_i32 = arith.constant 0 : i32
    %c0_i32_0 = arith.constant 0 : i32
    return %arg0, %c0_i32, %arg1 : i32, i32, i32
  }
  func.func @transform_5(%arg0: i32, %arg1: i32) -> (i32, i32, i32) {
    %c0_i32 = arith.constant 0 : i32
    %c0_i32_0 = arith.constant 0 : i32
    %c0_i32_1 = arith.constant 0 : i32
    return %arg0, %c0_i32, %c0_i32_0 : i32, i32, i32
  }
}

</mosaic_0001>

<bundles_post_ra>
// kernel: tpu_custom_call.1
= control target key start
LH: loop header
LB: loop body
LE: loop exit
PB: predicated region body
PF: predicated region fallthrough
CT: control target
= control target key end

     0   :  { %s1496_s0 = inlined_call_operand.hbm [shape: bf16[2,4,512], index: 0, kind: input, shape index: {}]   ;;  %s1497_s1 = inlined_call_operand.hbm [shape: bf16[2,4,512], index: 1, kind: input, shape index: {}]   ;;  %s1498_s2 = inlined_call_operand.hbm [shape: bf16[16,36], index: 2, kind: input, shape index: {}]   ;;  %s1499_s3 = inlined_call_operand.vmem [shape: f32[1,384], index: 3, kind: input, shape index: {}]   ;;  %s1500_s4 = inlined_call_operand.hbm [shape: bf16[2,16,384], index: 4, kind: output, shape index: {0}]   ;;  %s1501_s5 = inlined_call_operand.vmem [shape: f32[2,32,1], index: 5, kind: output, shape index: {1}]  }
   0x1   :  { %1513 = sst [smem:[#allocation21_spill]] %s1498_s2 }
   0x2   :  { %1514 = sst [smem:[#allocation22_spill]] %s1499_s3 }
   0x3   :  { %1515 = sst [smem:[#allocation23_spill]] %s1500_s4 }
   0x4   :  { %11 = vsyncpa [#allocation4], 0 }
   0x5   :  { %13 = vsyncpa [#allocation4 + $0x1], 0 }
   0x6   :  { %14 = vsyncpa [#allocation7], 0 }
   0x7   :  { %16 = vsyncpa [#allocation7 + $0x1], 0 }
   0x8   :  { %17 = vsyncpa [#allocation5], 0 }
   0x9   :  { %19 = vsyncpa [#allocation5 + $0x1], 0  ;;  %s1170_s18 = smov 0   ;;  %s1172_s19 = smov 0  }
   0xa   :  { %s1174_s20 = smov 0   ;;  %s1176_s21 = smov 0  }
   0xb   :  { %s1178_s22 = smov 0   ;;  %s1180_s23 = smov 0  }
   0xc   :  { %s1182_s24 = smov 0   ;;  %s1184_s25 = smov 0  }
   0xd   :  { %s1186_s26 = smov 0   ;;  %s1188_s27 = smov 0  }
   0xe   :  { %s1190_s28 = smov 0  }
   0xf LB: > { %1516 = sst [smem:[#allocation14_spill]] %s1102_s24  ;;  %s1226_s29 = sadd.s32 4294967295, %s1118_s28   ;;  %s1118_s28 = sphi %s1190_s28, %s25_s28   ;;  %s1114_s27 = sphi %s1188_s27, %s1548_s27   ;;  %s1110_s26 = sphi %s1186_s26, %s1556_s26   ;;  %s1106_s25 = sphi %s1184_s25, %s1546_s25   ;;  %s1102_s24 = sphi %s1182_s24, %s1555_s24   ;;  %s1098_s23 = sphi %s1180_s23, %s1554_s23   ;;  %s1094_s22 = sphi %s1178_s22, %s1553_s22   ;;  %s1090_s21 = sphi %s1176_s21, %s1552_s21   ;;  %s1086_s20 = sphi %s1174_s20, %s1551_s20   ;;  %s1082_s19 = sphi %s1172_s19, %s1550_s19   ;;  %s1078_s18 = sphi %s1170_s18, %s1549_s18  }
  0x10   : > { %1517 = sst [smem:[#allocation15_spill]] %s1114_s27  ;;  %p722_p0 = scmp.ge.s32.totalorder %s1118_s28, 1 }
  0x11   : > { %p1511_p1 = scmp.eq.s32.totalorder %s1226_s29, 0  ;;  %p201_p2 = scmp.lt.s32.totalorder %s1118_s28, 7 }
  0x12   : > { %s1120_s6 = smov [#allocation8]  }
  0x13   : > { %p1231_p3 = pnand %p722_p0, %p201_p2  ;;  %s213_s7 = sshll.u32 %s1120_s6, 4  ;;  %s214_s7 = int_to_ptr.vmem [resolvable:$true] %s213_s7 }
  0x14   : > { %s918_s8 = scalar_lea.vmem %s214_s7, 128  ;;  %p926_p10 = scmp.lt.s32.totalorder %s214_s7, %s214_s7 }
  0x15   : > { %p782_p4 = pneg %p1231_p3  ;;  %p919_p7 = scmp.ne.s32.totalorder %s214_s7, %s918_s8 }
  0x16   : > { %p927_p11 = scmp.lt.s32.totalorder %s918_s8, %s918_s8 }
  0x17   : > { %p783_p5 = pnand %p782_p4, %p1511_p1 }
  0x18   : > { %p928_p12 = por %p927_p11, %p926_p10 }
  0x19   : > { %p909_p6 = pneg %p783_p5 }
  0x1b   : > { %p921_p8 = pnand %p919_p7, %p909_p6 }
  0x1d   : > { %p922_p9 = pneg %p921_p8 }
  0x1f   : > { %p929_p13 = pnand %p928_p12, %p922_p9 }
  0x21   : > { %932 = shalt.err (!%p929_p13)
}
  0x22   : > { %s1121_s9 = smov 64   ;;  %s1122_s10 = smov 4  }
  0x23   : > { %s1519_s2 = sld [smem:[#allocation21_spill]]  ;;  %s721_s13 = sadd.s32 4294967294, %s1118_s28  }
  0x24   : > { %s34_s14 = sadd.s32 1, %s1110_s26  ;;  %s37_s15 = sadd.s32 1, %s1114_s27 }
  0x25   : > { %p35_p0 = scmp.ge.s32.totalorder %s34_s14, 3  ;;  %s46_s16 = sadd.s32 1, %s1098_s23 }
  0x26   : > { %p53_p2 = scmp.ne.s32.totalorder %s1098_s23, %s1094_s22  ;;  %p1512_p4 = scmp.eq.s32.totalorder %s1118_s28, 0 }
  0x27   : > { %s1249_s17 = scalar_select %p35_p0, 0, %s34_s14  }
  0x28   : > { %s1558_s15 = smov (!%p35_p0, %s37_s15), %s1114_s27  ;;  %p59_p7 = scmp.ne.s32.totalorder %s1094_s22, %s1090_s21 }
  0x29   : > { %785 = dma.hbm_to_vmem [thread:$0]  (!%p783_p5), %s1519_s2, 128, %s214_s7, [#allocation7], %s1121_s9, %s1121_s9, %s1122_s10  }
  0x2a   : > { %1520 = sst [smem:[#allocation16_spill]] %s1249_s17  ;;  %s42_s6 = ssub.s32 %s1110_s26, %s1249_s17 }
  0x2b   : > { %p1259_p5 = por %p1512_p4, %p53_p2  ;;  %p39_p6 = scmp.ge.s32.totalorder %s1558_s15, 2 }
  0x2c   : > { %s70_s8 = sadd.s32 1, %s1249_s17  ;;  %p162_p8 = scmp.eq.s32.totalorder %s1226_s29, 5 }
  0x2d   : > { %s1560_s15 = smov (%p39_p6, %s1558_s15), 0  ;;  %p1274_p9 = por %p1511_p1, %p59_p7 }
  0x2e   : > { %1522 = sst [smem:[#allocation17_spill]] %s1560_s15  ;;  %s72_s10 = ssub.s32 %s34_s14, %s70_s8 }
  0x2f   : > { %s41_s11 = ssub.s32 %s1114_s27, %s1560_s15  ;;  %p1283_p10 = por %p162_p8, %p53_p2 }
  0x30   : > { %s43_s2 = sor.u32 %s42_s6, %s41_s11  ;;  %s73_s17 = sor.u32 %s72_s10, %s41_s11 }
  0x31   : > { %s1524_s12 = scalar_select %p1283_p10, 1, 0 }
  0x32   : > { %p44_p11 = scmp.eq.s32.totalorder %s43_s2, 0  ;;  %p1287_p12 = scmp.eq.s32.totalorder %s73_s17, 0 }
  0x33   : > { %1525 = sst [smem:[#allocation18_spill]] %s1524_s12  ;;  %p168_p13 = scmp.eq.s32.totalorder %s721_s13, 5 }
  0x34   : > { %p1510_p0 = scmp.lt.s32.totalorder %s1118_s28, 6  ;;  %s227_s8 = sand.u32 1, %s1098_s23  }
  0x35   : > { %s1293_s3 = scalar_select %p44_p11, %s1098_s23, %s46_s16  }
  0x36   : > { %p1298_p6 = por %p168_p13, %p59_p7  ;;  %s725_s15 = sshll.u32 %s227_s8, 1 }
  0x37   : > { %1527 = sst [smem:[#allocation19_spill]] %s1293_s3  ;;  %s726_s6 = sshll.u32 %s1114_s27, 2 }
  0x38   : > { %s1528_s14 = scalar_select %p1298_p6, 1, 0 }
  0x39   : > { %s236_s10 = sadd.s32 %s1110_s26, %s726_s6  ;;  %s231_s11 = scalar_lea.vmem [#allocation3], %s725_s15 }
  0x3a   : > { %1529 = sst [smem:[#allocation20_spill]] %s1528_s14  ;;  %s240_s12 = sshll.u32 %s231_s11, 4  ;;  %s241_s12 = int_to_ptr.vmem [resolvable:$true] %s240_s12 }
  0x3b   : > { %s727_s2 = sshll.u32 %s236_s10, 5  ;;  %p1312_p2 = pnand %p1510_p0, %p1259_p5 }
  0x3c   : > { %s238_s13 = scalar_lea.hbm %s1496_s0, %s727_s2  ;;  %s1319_s27 = scalar_lea.hbm %s1497_s1, %s727_s2 }
  0x3d   : > { %s228_s15 = scalar_lea.sflag [#allocation4], %s227_s8  ;;  %p935_p7 = pneg %p1312_p2 }
  0x3e   : > { %s946_s6 = scalar_lea.vmem %s241_s12, 32  ;;  %s1123_s24 = smov [#allocation3]  }
  0x3f   : > { %p947_p8 = scmp.ne.s32.totalorder %s241_s12, %s946_s6  ;;  %s951_s7 = sshll.u32 %s1123_s24, 4  ;;  %s952_s7 = int_to_ptr.vmem [resolvable:$false] %s951_s7 }
  0x40   : > { %s953_s10 = scalar_lea.vmem %s952_s7, 64  ;;  %p954_p5 = scmp.lt.s32.totalorder %s241_s12, %s952_s7 }
  0x41   : > { %p949_p11 = pnand %p947_p8, %p935_p7  ;;  %p955_p0 = scmp.lt.s32.totalorder %s953_s10, %s946_s6 }
  0x43   : > { %p950_p13 = pneg %p949_p11  ;;  %p956_p1 = por %p955_p0, %p954_p5 }
  0x45   : > { %p957_p4 = pnand %p956_p1, %p950_p13 }
  0x47   : > { %960 = shalt.err (!%p957_p4)
}
  0x48   : > { %789 = dma.hbm_to_vmem [thread:$0]  (!%p1312_p2), %s238_s13, 32, %s241_s12, %s228_s15  }
  0x49   : > { %s76_s3 = sadd.s32 1, %s1086_s20  ;;  %p83_p0 = scmp.ne.s32.totalorder %s1086_s20, %s1082_s19 }
  0x4a   : > { %s1331_s14 = scalar_select %p1287_p12, %s1086_s20, %s76_s3  }
  0x4b   : > { %p1531_p1 = scmp.eq.s32.totalorder %s1118_s28, 0  ;;  %p89_p7 = scmp.ne.s32.totalorder %s1082_s19, %s1078_s18 }
  0x4c   : > { %s247_s8 = sand.u32 1, %s1118_s28   ;;  %s249_s11 = sand.u32 1, %s1086_s20  }
  0x4d   : > { %p85_p4 = por %p83_p0, %p1531_p1  ;;  %p1532_p8 = scmp.eq.s32.totalorder %s1226_s29, 0 }
  0x4e   : > { %s728_s17 = sshll.u32 %s249_s11, 1  ;;  %s615_s16 = scalar_lea.hbm %s1319_s27, 32 }
  0x4f   : > { %p1341_p11 = por %p89_p7, %p1532_p8  ;;  %p1534_p13 = scmp.lt.s32.totalorder %s1118_s28, 6 }
  0x50   : > { %s251_s4 = scalar_lea.vmem [#allocation6], %s728_s17  ;;  %s248_s15 = scalar_lea.sflag [#allocation7], %s247_s8 }
  0x51   : > { %p1348_p5 = pnand %p1534_p13, %p85_p4  ;;  %s261_s13 = sshll.u32 %s251_s4, 4  ;;  %s262_s13 = int_to_ptr.vmem [resolvable:$true] %s261_s13 }
  0x52   : > { %s974_s18 = scalar_lea.vmem %s262_s13, 32  ;;  %s1124_s6 = smov [#allocation6]  }
  0x53   : > { %p963_p12 = pneg %p1348_p5  ;;  %p975_p2 = scmp.ne.s32.totalorder %s262_s13, %s974_s18 }
  0x54   : > { %s979_s24 = sshll.u32 %s1124_s6, 4  ;;  %s980_s24 = int_to_ptr.vmem [resolvable:$false] %s979_s24 }
  0x55   : > { %p977_p0 = pnand %p975_p2, %p963_p12  ;;  %s981_s27 = scalar_lea.vmem %s980_s24, 64 }
  0x56   : > { %p982_p7 = scmp.lt.s32.totalorder %s262_s13, %s980_s24  ;;  %p983_p4 = scmp.lt.s32.totalorder %s981_s27, %s974_s18 }
  0x57   : > { %p978_p1 = pneg %p977_p0 }
  0x58   : > { %p984_p8 = por %p983_p4, %p982_p7 }
  0x5a   : > { %p985_p13 = pnand %p984_p8, %p978_p1 }
  0x5c   : > { %988 = shalt.err (!%p985_p13)
}
  0x5d   : > { %792 = dma.hbm_to_vmem [thread:$0]  (!%p1348_p5), %s615_s16, 32, %s262_s13, %s248_s15  }
  0x5e   : > { %276 = sbr.rel (%p1231_p3) target bundleno = 643 (0x283), region = 36  ;;  %s1359_s7 = sand.u32 (!%p1231_p3), 1, %s1094_s22  }
  0x5f   : > { %s732_s10 = sshll.u32 (!%p1231_p3), %s1359_s7, 1  ;;  %s279_s3 = scalar_lea.sflag (!%p1231_p3), [#allocation4], %s1359_s7 }
  0x60   : > { %s282_s8 = scalar_lea.vmem (!%p1231_p3), [#allocation3], %s732_s10 }
  0x63   : > { %1061 = dma.done.wait (%p1274_p9), %s279_s3, 32  }
  0x64   : > { %1063 = vsyncadd (%p1274_p9), %s279_s3, 4294967264  ;;  %s287_s11 = sand.u32 1, %s1226_s29   ;;  %s289_s30 = sand.u32 1, %s1082_s19  }
  0x65   : > { %s733_s17 = sshll.u32 %s289_s30, 1  ;;  %s288_s16 = scalar_lea.sflag [#allocation7], %s287_s11 }
  0x66   : > { %s291_s12 = scalar_lea.vmem [#allocation6], %s733_s17 }
  0x67   : > { %1065 = dma.done.wait (%p1341_p11), %s288_s16, 32  }
  0x68   : > { %1067 = vsyncadd (%p1341_p11), %s288_s16, 4294967264  ;;  %p1536_p3 = scmp.eq.s32.totalorder %s1226_s29, 0 }
  0x6a   : > { %1069 = dma.done.wait (%p1536_p3), [#allocation7], 128   ;;  %p1537_p5 = pmov %p1536_p3 }
  0x6b   : > { %v1125_v0 = vmov 0.0   ;;  %p339_p9 = scmp.lt.s32.totalorder %s1106_s25, 1  ;;  %v1380_v1 = vld [vmem:[%s282_s8] sm:$0x3]  ;;  %s1126_s4 = smov 109   ;;  %vm1131_vm0 = vmmov 0  }
  0x6c   : > { %1071 = vsyncadd (%p1537_p5), [#allocation7], 4294967168  ;;  %761 = vmatprep.subr.bf16.mxu0 %v1125_v0  ;;  %373 = vrot.lane.b32.xlu1 %v1380_v1, %s1126_s4  ;;  %s1127_s2 = smov 90   ;;  %v346_v2 = vld [vmem:[%s291_s12] sm:$0x3]  ;;  %v349_v4 = vrot.slane %v1380_v1, 6 }
  0x6d   : > { %s340_s9 = scalar_select %p339_p9, %s1106_s25, 1  ;;  %397 = vrot.lane.b32.xlu0 %v1380_v1, %s1127_s2  ;;  %v350_v3 = vrot.slane %v346_v2, 6  ;;  %v358_v5 = vrot.slane %v346_v2, 4  ;;  %v357_v6 = vrot.slane %v1380_v1, 4  ;;  %v366_v7 = vrot.slane %v346_v2, 2  ;;  %767 = vmatprep.mubr.msk.bf16.mxu0 %vm1131_vm0, %v1125_v0  ;;  %v906_v40 = vld [vmem:[#allocation8] sm:$0xff]  }
  0x6e   : > { %s1128_s6 = smov 108   ;;  %s1129_s24 = smov 92   ;;  %v365_v8 = vrot.slane %v1380_v1, 2  ;;  %vm401_vm1 = vcmask 736256   ;;  %vm403_vm2 = vcmask 1041408   ;;  %vm383_vm3 = vcmask 883712  }
  0x6f   : > { %s749_s13 = sshll.u32 %s340_s9, 5  ;;  %s1130_s27 = smov 91   ;;  %vm389_vm4 = vcmask 752640   ;;  %vm377_vm5 = vcmask 891904   ;;  %vm395_vm6 = vcmask 744448   ;;  %vm407_vm7 = vcmask 1043456  }
  0x70   : > { %s1387_s18 = scalar_lea.vmem %s1501_s5, %s749_s13  ;;  %375 = vrot.lane.b32.xlu1 %v346_v2, %s1126_s4  ;;  %s1132_s10 = smov 127   ;;  %vm410_vm8 = vcmask 1045504   ;;  %vm355_vm9 = vcmask 1039360   ;;  %vm363_vm10 = vcmask 1031168   ;;  %vm371_vm11 = vcmask 900096  }
  0x71   : > { %399 = vrot.lane.b32.xlu0 %v346_v2, %s1127_s2  ;;  %s1133_s3 = smov 126   ;;  %s1134_s8 = smov 110   ;;  %vm429_vm12 = vcmask 293888  }
  0x72   : > { %s1538_s11 = sld [smem:[#allocation14_spill]]  ;;  %s735_s4 = sshll.u32 %s1359_s7, 3 }
  0x73   : > { %s1539_s12 = sld [smem:[#allocation22_spill]]  ;;  %s1409_s2 = scalar_lea.vmem [#allocation9], %s735_s4 }
  0x74   : > { %381 = vrot.lane.b32.xlu1 %v350_v3, %s1128_s6 }
  0x75   : > { %379 = vrot.lane.b32.xlu0 %v349_v4, %s1128_s6 }
  0x78   : > { %387 = vrot.lane.b32.xlu1 %v358_v5, %s1129_s24  ;;  %p336_p11 = scmp.lt.s32.totalorder %s1538_s11, 2  ;;  %p743_p12 = scmp.ne.s32.totalorder %s1538_s11, 0 }
  0x79   : > { %385 = vrot.lane.b32.xlu0 %v357_v6, %s1129_s24 }
  0x7a   : > { %s337_s30 = scalar_select %p336_p11, %s1538_s11, 2 }
  0x7c   : > { %393 = vrot.lane.b32.xlu1 %v366_v7, %s1130_s27  ;;  %s338_s9 = scalar_lea.vmem %s1539_s12, %s337_s30 }
  0x7d   : > { %391 = vrot.lane.b32.xlu0 %v365_v8, %s1130_s27  ;;  %v742_v41 = vld [vmem:[%s338_s9] ss:$0 sm:$0xff] }
  0x80   : > { %353 = vrot.lane.b32.xlu1 %v350_v3, %s1132_s10 }
  0x81   : > { %351 = vrot.lane.b32.xlu0 %v349_v4, %s1132_s10 }
  0x84   : > { %361 = vrot.lane.b32.xlu1 %v358_v5, %s1133_s3 }
  0x85   : > { %359 = vrot.lane.b32.xlu0 %v357_v6, %s1133_s3 }
  0x88   : > { %369 = vrot.lane.b32.xlu1 %v366_v7, %s1134_s8 }
  0x89   : > { %367 = vrot.lane.b32.xlu0 %v365_v8, %s1134_s8 }
  0xde   : > { %v374_v9 = vpop.permute.xlu1 %373 }
  0xdf   : > { %v398_v10 = vpop.permute.xlu0 %397 }
  0xe2   : > { %v376_v11 = vpop.permute.xlu1 %375 }
  0xe3   : > { %v400_v12 = vpop.permute.xlu0 %399  ;;  %v378_v21 = vsel %vm377_vm5, %v374_v9, %v376_v11 }
  0xe4   : > { %v402_v13 = vsel %vm401_vm1, %v398_v10, %v400_v12 }
  0xe5   : > { %v434_v14 = vsel %vm403_vm2, %v402_v13, 0 }
  0xe6   : > { %762 = vmatpush3.bf16.msra.mxu0 %v434_v14  ;;  %v382_v15 = vpop.permute.xlu1 %381 }
  0xe7   : > { %v380_v16 = vpop.permute.xlu0 %379  ;;  %763 = vmatprep.subr.bf16.mxu0 %v1125_v0 }
  0xe8   : > { %v384_v19 = vsel %vm383_vm3, %v380_v16, %v382_v15 }
  0xe9   : > { %v416_v22 = vsel %vm403_vm2, %v378_v21, %v384_v19 }
  0xea   : > { %v388_v17 = vpop.permute.xlu1 %387 }
  0xeb   : > { %v386_v18 = vpop.permute.xlu0 %385 }
  0xec   : > { %v390_v20 = vsel %vm389_vm4, %v386_v18, %v388_v17 }
  0xed   : > { %v418_v26 = vsel %vm407_vm7, %v416_v22, %v390_v20 }
  0xee   : > { %v394_v23 = vpop.permute.xlu1 %393 }
  0xef   : > { %v392_v24 = vpop.permute.xlu0 %391 }
  0xf0   : > { %v396_v25 = vsel %vm395_vm6, %v392_v24, %v394_v23 }
  0xf1   : > { %v420_v27 = vsel %vm410_vm8, %v418_v26, %v396_v25 }
  0xf2   : > { %764 = vmatpush3.bf16.msra.mxu0 %v420_v27  ;;  %v354_v28 = vpop.permute.xlu1 %353 }
  0xf3   : > { %v352_v29 = vpop.permute.xlu0 %351  ;;  %765 = vmatprep.subr.bf16.mxu0 %v1125_v0 }
  0xf4   : > { %v356_v32 = vsel %vm355_vm9, %v352_v29, %v354_v28 }
  0xf5   : > { %v406_v34 = vsel %vm403_vm2, %v1380_v1, %v356_v32 }
  0xf6   : > { %v362_v30 = vpop.permute.xlu1 %361 }
  0xf7   : > { %v360_v31 = vpop.permute.xlu0 %359 }
  0xf8   : > { %v364_v33 = vsel %vm363_vm10, %v360_v31, %v362_v30 }
  0xf9   : > { %v409_v38 = vsel %vm407_vm7, %v406_v34, %v364_v33 }
  0xfa   : > { %v370_v35 = vpop.permute.xlu1 %369 }
  0xfb   : > { %v368_v36 = vpop.permute.xlu0 %367 }
  0xfc   : > { %v372_v37 = vsel %vm371_vm11, %v368_v36, %v370_v35 }
  0xfd   : > { %v412_v39 = vsel %vm410_vm8, %v409_v38, %v372_v37 }
  0xfe   : > { %766 = vmatpush3.bf16.msra.mxu0 %v412_v39 }
 0x101   : > { %768 = vmatmul.mubr.msk.bf16.vlgmr.msra.gmra.mxu0 %vm429_vm12, %v906_v40 }
 0x1c1   : > { %v470_v42 = vpop.f32.mrf.mxu0 }
 0x1c2   : > { %v494_v43 = vmul.f32 %v742_v41, %v470_v42 }
 0x1c3   : > { %v769_v44 = vpop.f32.mrf.mxu0 }
 0x1c4   : > { %499 = sbr.rel (%p743_p12) target bundleno = 460 (0x1cc), region = 52 }
 0x1c5   : > { %v473_v45 = vpop.f32.mrf.mxu0 }
 0x1c6   : > { %v755_v46 = vpack.c.bf16 %v473_v45, %v470_v42  ;;  %v495_v47 = vmul.f32 %v742_v41, %v473_v45 }
 0x1c7   : > { %v770_v48 = vpop.f32.mrf.mxu0 }
 0x1c8   : > { %756 = vst [vmem:[%s1409_s2] sm:$0xff] %v755_v46  }
 0x1c9   : > { %vm500_vm13 = vcmask 7168   ;;  %v1135_v49 = vmov 0.0  }
 0x1ca   : > { %501 = vst.msk [vmem:[#allocation2] sm:$0xff] %vm500_vm13, %v1135_v49  ;;  %502 = vst.msk [vmem:[#allocation2 + $0x8] sm:$0xff] %vm500_vm13, %v1135_v49 }
 0x1cb   : > { %503 = vst.msk [vmem:[#allocation2 + $0x10] sm:$0xff] %vm500_vm13, %v1135_v49  ;;  %504 = vst.msk [vmem:[#allocation2 + $0x18] sm:$0xff] %vm500_vm13, %v1135_v49 }
 0x1cc PF: > { %507 = vadd.xlane.f32.xlu0 %v494_v43  ;;  %v518_v50 = vmul.f32 %v494_v43, %v494_v43  ;;  %v519_v51 = vmul.f32 %v495_v47, %v495_v47  ;;  %vm513_vm14 = vcmask 7168   ;;  %s1540_s13 = sld [smem:[#allocation14_spill]] }
 0x1ce   : > { %520 = vadd.xlane.f32.xlu1 %v518_v50 }
 0x1d0   : > { %509 = vadd.xlane.f32.xlu0 %v495_v47 }
 0x1d1   : > { %v505_v52 = vld [vmem:[#allocation2] sm:$0xff]  ;;  %v506_v57 = vld [vmem:[#allocation2 + $0x8] sm:$0xff] }
 0x1d2   : > { %522 = vadd.xlane.f32.xlu1 %v519_v51  ;;  %v516_v54 = vld [vmem:[#allocation2 + $0x10] sm:$0xff]  ;;  %v517_v60 = vld [vmem:[#allocation2 + $0x18] sm:$0xff]  ;;  %p744_p2 = scmp.ne.s32.totalorder %s1540_s13, 2 }
 0x255   : > { %v508_v53 = vpop.xlane.xlu0 %507 }
 0x256   : > { %v511_v55 = vadd.f32 %v508_v53, %v505_v52 }
 0x257   : > { %v521_v56 = vpop.xlane.xlu1 %520 }
 0x258   : > { %514 = vst.msk [vmem:[#allocation2] sm:$0xff] %vm513_vm14, %v511_v55  ;;  %v524_v58 = vadd.f32 %v521_v56, %v516_v54 }
 0x259   : > { %v510_v59 = vpop.xlane.xlu0 %509 }
 0x25a   : > { %526 = vst.msk [vmem:[#allocation2 + $0x10] sm:$0xff] %vm513_vm14, %v524_v58  ;;  %v512_v61 = vadd.f32 %v510_v59, %v506_v57  ;;  %531 = sbr.rel (%p744_p2) target bundleno = 615 (0x267), region = 56 }
 0x25b   : > { %v523_v62 = vpop.xlane.xlu1 %522 }
 0x25c   : > { %515 = vst.msk [vmem:[#allocation2 + $0x8] sm:$0xff] %vm513_vm14, %v512_v61  ;;  %v525_v63 = vadd.f32 %v523_v62, %v517_v60 }
 0x25e   : > { %527 = vst.msk [vmem:[#allocation2 + $0x18] sm:$0xff] %vm513_vm14, %v525_v63 }
 0x25f   : > { %v532_v0 = vld [vmem:[#allocation2] sm:$0xff] }
 0x260   : > { %536 = vst.msk [vmem:[%s1387_s18] sm:$0xff] %vm513_vm14, %v532_v0 }
 0x261   : > { %v534_v2 = vld [vmem:[#allocation2 + $0x10] sm:$0xff] }
 0x262   : > { %538 = vst.msk [vmem:[%s1387_s18 + $0x10] sm:$0xff] %vm513_vm14, %v534_v2 }
 0x263   : > { %v533_v1 = vld [vmem:[#allocation2 + $0x8] sm:$0xff] }
 0x264   : > { %537 = vst.msk [vmem:[%s1387_s18 + $0x8] sm:$0xff] %vm513_vm14, %v533_v1 }
 0x265   : > { %v535_v3 = vld [vmem:[#allocation2 + $0x18] sm:$0xff] }
 0x266   : > { %539 = vst.msk [vmem:[%s1387_s18 + $0x18] sm:$0xff] %vm513_vm14, %v535_v3 }
 0x267 PF: > { %s1541_s15 = sld [smem:[#allocation14_spill]]  ;;  %s771_s6 = smul.u32 6, %s1106_s25 }
 0x268   : > { %s560_s24 = sshll.u32 %s1409_s2, 4  ;;  %s1543_s11 = sld [smem:[#allocation23_spill]]  ;;  %s1429_s24 = int_to_ptr.vmem [resolvable:$true] %s560_s24 }
 0x269   : > { %s541_s18 = scalar_lea.sflag [#allocation5], %s1359_s7  ;;  %s990_s17 = scalar_lea.vmem %s1429_s24, 128 }
 0x26a   : > { %p991_p0 = scmp.ne.s32.totalorder %s1429_s24, %s990_s17  ;;  %s1136_s25 = smov [#allocation9]  }
 0x26b   : > { %s994_s16 = sshll.u32 %s1136_s25, 4  ;;  %s995_s16 = int_to_ptr.vmem [resolvable:$false] %s994_s16 }
 0x26c   : > { %p992_p1 = pnand %p991_p0, %p1283_p10  ;;  %s996_s12 = scalar_lea.vmem %s995_s16, 256 }
 0x26d   : > { %s557_s27 = sadd.s32 %s1541_s15, %s771_s6  ;;  %p997_p4 = scmp.lt.s32.totalorder %s1429_s24, %s995_s16 }
 0x26e   : > { %s746_s10 = sshll.u32 %s557_s27, 6  ;;  %p993_p7 = pneg %p992_p1 }
 0x26f   : > { %s1434_s30 = scalar_lea.hbm %s1543_s11, %s746_s10  ;;  %p998_p8 = scmp.lt.s32.totalorder %s996_s12, %s990_s17 }
 0x271   : > { %p999_p13 = por %p998_p8, %p997_p4 }
 0x273   : > { %p1000_p3 = pnand %p999_p13, %p993_p7 }
 0x275   : > { %1003 = shalt.err (!%p1000_p3)
}
 0x276   : > { %s1004_s9 = scalar_lea.hbm %s1434_s30, 128  ;;  %s1008_s13 = scalar_lea.hbm %s1543_s11, 768 }
 0x277   : > { %p1005_p5 = scmp.ne.s32.totalorder %s1434_s30, %s1004_s9  ;;  %p1009_p12 = scmp.lt.s32.totalorder %s1434_s30, %s1543_s11 }
 0x278   : > { %p1010_p2 = scmp.lt.s32.totalorder %s1008_s13, %s1004_s9 }
 0x279   : > { %p1006_p9 = pnand %p1005_p5, %p1283_p10 }
 0x27a   : > { %p1011_p0 = por %p1010_p2, %p1009_p12 }
 0x27b   : > { %p1007_p11 = pneg %p1006_p9 }
 0x27d   : > { %p1012_p1 = pnand %p1011_p0, %p1007_p11 }
 0x27f   : > { %1015 = shalt.err (!%p1012_p1)
}
 0x280   : > { %s1137_s27 = smov 64   ;;  %s1138_s10 = smov 192  }
 0x281   : > { %s1139_s3 = smov 4  }
 0x282   : > { %780 = dma.vmem_to_hbm [thread:$0]  (%p1283_p10), %s1429_s24, 128, %s1434_s30, %s541_s18, %s1137_s27, %s1138_s10, %s1139_s3  }
 0x283 PF: > { %p800_p7 = scmp.ge.s32.totalorder %s1118_s28, 2  ;;  %s578_s17 = sand.u32 1, %s1090_s21  }
 0x284   : > { %s579_s25 = scalar_lea.sflag [#allocation5], %s578_s17 }
 0x285   : > { %p794_p4 = pnand %p800_p7, %p1298_p6 }
 0x287   : > { %p795_p8 = pneg %p794_p4 }
 0x289   : > { %1073 = dma.done.wait (%p795_p8), %s579_s25, 128  }
 0x28a   : > { %1075 = vsyncadd (%p795_p8), %s579_s25, 4294967168  ;;  %s25_s28 = sadd.s32 1, %s1118_s28   ;;  %s1545_s7 = sld [smem:[#allocation19_spill]] }
 0x28b   : > { %p22_p13 = scmp.ge.s32.totalorder %s25_s28, 8   ;;  %s1546_s25 = sld [smem:[#allocation15_spill]] }
 0x28c   : > { %s1547_s29 = sld [smem:[#allocation16_spill]]  ;;  %s1549_s18 = smov %s1082_s19 }
 0x28d   : > { %s1548_s27 = sld [smem:[#allocation17_spill]]  ;;  %s1550_s19 = smov %s1086_s20 }
 0x28e   : > { %s1551_s20 = smov %s1331_s14  ;;  %s1552_s21 = smov %s1094_s22 }
 0x28f   : > { %s1553_s22 = smov %s1098_s23  ;;  %s1555_s24 = smov %s1110_s26 }
 0x290   : > { %s1554_s23 = smov %s1545_s7  ;;  %24 = sbr.rel (!%p22_p13) target bundleno = 15 (0xf), region = 121 }
 0x292   : > { %s1556_s26 = smov %s1547_s29 }
 0x295   :  { %592 = vsyncpa [#allocation4], 1 }
 0x296   :  { %594 = vsyncpa [#allocation4 + $0x1], 1 }
 0x297   :  { %595 = vsyncpa [#allocation7], 1 }
 0x298   :  { %597 = vsyncpa [#allocation7 + $0x1], 1 }
 0x299   :  { %598 = vsyncpa [#allocation5], 1 }
 0x29a   :  { %600 = vsyncpa [#allocation5 + $0x1], 1 }

</bundles_post_ra>
